<compile_context>
chip_gen: v7x
topology: tpu7x:2x2x1
jax: 0.10.0
libtpu: 0.0.40
codegen_flags: <defaults>
</compile_context>

<pallas_src>
import jax
import jax.numpy as jnp
from jax.experimental import pallas as pl
from jax.experimental.pallas import tpu as pltpu


def _round_up(a: int, m: int) -> int:
    return ((a + m - 1) // m) * m


def _patch_embed_kernel(p_ref, w_ref, pos_ref, o_ref):
    # p_ref:   (tm, Kp)  bf16   patch rows for one (m-tile, batch) grid point
    # w_ref:   (Kp, Ep)  bf16   projection weight (conv weight flattened, padded)
    # pos_ref: (tm, Ep)  f32    positional embedding (+ folded conv bias / cls row)
    # o_ref:   (tm, Ep)  out_dtype
    y = jnp.dot(p_ref[...], w_ref[...], preferred_element_type=jnp.float32)
    o_ref[...] = (y + pos_ref[...]).astype(o_ref.dtype)


def patch_embedding_forward(x, conv_w, conv_b, pos_emb, cls_token, patch_size,
                            tm=None, out_dtype=jnp.bfloat16):
    """x: (B, C, H, W) float32 NCHW (same as PyTorch).
    conv_w: (E, C, p, p), conv_b: (E,), pos_emb: (1, N+1, E), cls_token: (1, 1, E).
    Returns (B, N+1, E) in `out_dtype` (bf16 by default; kernel is HBM-bound)."""
    B, C, H, W = x.shape
    E = conv_w.shape[0]
    p = patch_size
    nh, nw = H // p, W // p
    N = nh * nw
    R = N + 1                      # full sequence length incl. the cls row
    K = C * p * p

    # ---- tiling / padding (lane-dense last dims, bf16-packed sublane rows) ----
    if tm is None:
        # 256-row tiles feed the 2x256^2 MXU; for short sequences keep tm a
        # multiple of 16 so the bf16 activation load stays unmasked.
        tm = 256 if R >= 256 else _round_up(R, 16)
    Np = _round_up(R, tm)          # padded rows per image (cls + patches + pad)
    Kp = _round_up(K, 128)         # lane-dense contraction dim
    Ep = _round_up(E, 128)         # lane-dense output dim

    # ---- glue: im2col to (B, R, K) bf16; row 0 of every image is the zero
    # cls row.  K order matches PyTorch's conv-weight flatten order (c, kh, kw).
    # TODO(synk): move this extraction into the kernel (see header note).
    patches = x.reshape(B, C, nh, p, nw, p)
    patches = jnp.transpose(patches, (0, 2, 4, 1, 3, 5)).astype(jnp.bfloat16)
    patches = patches.reshape(B, N, K)
    patches = jnp.pad(patches, ((0, 0), (1, Np - R), (0, Kp - K)))

    # conv weight (E, C, p, p) -> (Kp, Ep), bf16 for the MXU.
    w = conv_w.reshape(E, K).T
    w = jnp.pad(w, ((0, Kp - K), (0, Ep - E))).astype(jnp.bfloat16)

    # Positional table with the conv bias folded in and the cls row built in:
    #   row 0     = cls_token + pos_emb[0]   (zero patch row -> matmul gives 0)
    #   rows 1..N = pos_emb[1:] + conv_b
    # Kept f32: its DMA is deduped across the batch (constant block index on
    # the inner grid axis), so full precision is free.
    pos_full = jnp.concatenate(
        [cls_token[0] + pos_emb[0, 0:1, :],
         pos_emb[0, 1:, :] + conv_b[None, :]], axis=0)               # (R, E)
    pos_full = jnp.pad(pos_full, ((0, Np - R), (0, Ep - E))).astype(jnp.float32)

    out_itemsize = jnp.dtype(out_dtype).itemsize
    # Double-buffered VMEM footprint: patches + weight + pos + output tiles.
    vmem_needed = (2 * tm * Kp * 2 + 2 * Kp * Ep * 2
                   + 2 * tm * Ep * 4 + 2 * tm * Ep * out_itemsize)
    vmem_limit = int(min(max(2 * vmem_needed, 32 * 1024 * 1024),
                         128 * 1024 * 1024))

    out = pl.pallas_call(
        _patch_embed_kernel,
        out_shape=jax.ShapeDtypeStruct((B, Np, Ep), out_dtype),
        grid_spec=pltpu.PrefetchScalarGridSpec(
            num_scalar_prefetch=0,
            # Batch innermost: pos block index is constant across consecutive
            # steps, so Pallas skips its re-fetch for (B-1)/B of the grid.
            grid=(Np // tm, B),
            in_specs=[
                pl.BlockSpec((pl.Squeezed(), tm, Kp), lambda j, b: (b, j, 0)),
                pl.BlockSpec((Kp, Ep), lambda j, b: (0, 0)),
                pl.BlockSpec((tm, Ep), lambda j, b: (j, 0)),
            ],
            out_specs=pl.BlockSpec((pl.Squeezed(), tm, Ep),
                                   lambda j, b: (b, j, 0)),
        ),
        compiler_params=pltpu.CompilerParams(
            dimension_semantics=("parallel", "parallel"),
            vmem_limit_bytes=vmem_limit),
        cost_estimate=pl.CostEstimate(
            flops=2 * B * Np * Kp * Ep,
            transcendentals=0,
            bytes_accessed=(B * Np * Kp * 2 + Kp * Ep * 2 + Np * Ep * 4
                            + B * Np * Ep * out_itemsize)),
    )(patches, w, pos_full)

    # The kernel already emits the full [cls; patch] sequence; just slice off
    # the zero padding (no concatenate pass over the result anymore).
    if Np != R or Ep != E:
        out = out[:, :R, :E]
    return out                                                    # (B, N+1, E)


if __name__ == "__main__":
    # Small shapes consistent with the module.
    img_size, patch_size, in_channels, embed_dim = 16, 4, 4, 32
    B = 2
    num_patches = (img_size // patch_size) ** 2

    key = jax.random.PRNGKey(0)
    kx, kw, kb, kpos, kcls = jax.random.split(key, 5)

    x = jax.random.normal(kx, (B, in_channels, img_size, img_size), jnp.float32)
    conv_w = jax.random.normal(
        kw, (embed_dim, in_channels, patch_size, patch_size), jnp.float32) * 0.05
    conv_b = jax.random.normal(kb, (embed_dim,), jnp.float32) * 0.05
    pos_emb = jax.random.normal(kpos, (1, num_patches + 1, embed_dim), jnp.float32)
    cls_token = jax.random.normal(kcls, (1, 1, embed_dim), jnp.float32)

    out = patch_embedding_forward(x, conv_w, conv_b, pos_emb, cls_token, patch_size)
    out = jax.block_until_ready(out)

    # Pure-JAX reference (f32, conv via lax.conv_general_dilated).
    ref_conv = jax.lax.conv_general_dilated(
        x, conv_w, window_strides=(patch_size, patch_size), padding="VALID",
        dimension_numbers=("NCHW", "OIHW", "NCHW")) + conv_b[None, :, None, None]
    ref = jnp.transpose(ref_conv.reshape(B, embed_dim, num_patches), (0, 2, 1))
    ref = jnp.concatenate(
        [jnp.broadcast_to(cls_token, (B, 1, embed_dim)), ref], axis=1)
    ref = ref + pos_emb

    assert out.shape == (B, num_patches + 1, embed_dim)
    # bf16 matmul operands + bf16 output store -> relaxed tolerance.
    assert jnp.allclose(out.astype(jnp.float32), ref, atol=3e-2, rtol=3e-2)

    print("KERNEL_OK")
</pallas_src>

<mosaic_0001>
module attributes {stable_mosaic.version = 11 : i64} {
  func.func @_patch_embed_kernel(%arg0: i32, %arg1: i32, %arg2: memref<1x32x128xbf16, #tpu.memory_space<vmem>>, %arg3: memref<128x128xbf16, #tpu.memory_space<vmem>>, %arg4: memref<32x128xf32, #tpu.memory_space<vmem>>, %arg5: memref<1x32x128xbf16, #tpu.memory_space<vmem>>) attributes {dimension_semantics = [#tpu.dimension_semantics<parallel>, #tpu.dimension_semantics<parallel>], iteration_bounds = array<i64: 1, 2>, scalar_prefetch = 0 : i64, scratch_operands = 0 : i64, tpu.core_type = #tpu.core_type<tc>, window_params = [{transform_indices = @transform_0, window_bounds = array<i64: 1, 32, 128>}, {pipeline_mode = #tpu.pipeline_mode<synchronous>, transform_indices = @transform_1, window_bounds = array<i64: 128, 128>}, {transform_indices = @transform_2, window_bounds = array<i64: 32, 128>}, {transform_indices = @transform_3, window_bounds = array<i64: 1, 32, 128>}]} {
    %c0 = arith.constant 0 : index
    %c0_0 = arith.constant 0 : index
    %c0_1 = arith.constant 0 : index
    %0 = vector.load %arg2[%c0, %c0_0, %c0_1] : memref<1x32x128xbf16, #tpu.memory_space<vmem>>, vector<1x32x128xbf16>
    %1 = vector.shape_cast %0 : vector<1x32x128xbf16> to vector<32x128xbf16>
    %c0_2 = arith.constant 0 : index
    %c0_3 = arith.constant 0 : index
    %2 = vector.load %arg3[%c0_2, %c0_3] : memref<128x128xbf16, #tpu.memory_space<vmem>>, vector<128x128xbf16>
    %cst = arith.constant dense<0.000000e+00> : vector<32x128xf32>
    %3 = tpu.matmul %1, %2, %cst {dimension_numbers = #tpu.dot_dimension_numbers<[1], [0], [0], [1], [0, 0, 1, 1], [], []>} : vector<32x128xbf16>, vector<128x128xbf16>, vector<32x128xf32> -> vector<32x128xf32>
    %c0_4 = arith.constant 0 : index
    %c0_5 = arith.constant 0 : index
    %4 = vector.load %arg4[%c0_4, %c0_5] : memref<32x128xf32, #tpu.memory_space<vmem>>, vector<32x128xf32>
    %5 = arith.addf %3, %4 : vector<32x128xf32>
    %6 = arith.truncf %5 : vector<32x128xf32> to vector<32x128xbf16>
    %c0_6 = arith.constant 0 : index
    %c0_7 = arith.constant 0 : index
    %c0_8 = arith.constant 0 : index
    %7 = vector.load %arg5[%c0_6, %c0_7, %c0_8] : memref<1x32x128xbf16, #tpu.memory_space<vmem>>, vector<1x32x128xbf16>
    %8 = vector.shape_cast %7 : vector<1x32x128xbf16> to vector<32x128xbf16>
    %9 = vector.shape_cast %6 : vector<32x128xbf16> to vector<1x32x128xbf16>
    tpu.vector_store %arg5[%c0_6, %c0_7, %c0_8], %9 {strides = array<i32>} : memref<1x32x128xbf16, #tpu.memory_space<vmem>>, vector<1x32x128xbf16>,
    return
  }
  func.func @transform_0(%arg0: i32, %arg1: i32) -> (i32, i32, i32) {
    %c0_i32 = arith.constant 0 : i32
    %c0_i32_0 = arith.constant 0 : i32
    return %arg1, %arg0, %c0_i32 : i32, i32, i32
  }
  func.func @transform_1(%arg0: i32, %arg1: i32) -> (i32, i32) {
    %c0_i32 = arith.constant 0 : i32
    %c0_i32_0 = arith.constant 0 : i32
    %c0_i32_1 = arith.constant 0 : i32
    return %c0_i32, %c0_i32_0 : i32, i32
  }
  func.func @transform_2(%arg0: i32, %arg1: i32) -> (i32, i32) {
    %c0_i32 = arith.constant 0 : i32
    %c0_i32_0 = arith.constant 0 : i32
    return %arg0, %c0_i32 : i32, i32
  }
  func.func @transform_3(%arg0: i32, %arg1: i32) -> (i32, i32, i32) {
    %c0_i32 = arith.constant 0 : i32
    %c0_i32_0 = arith.constant 0 : i32
    return %arg1, %arg0, %c0_i32 : i32, i32, i32
  }
}

</mosaic_0001>

<bundles_post_ra>
// kernel: tpu_custom_call.1
= control target key start
LH: loop header
LB: loop body
LE: loop exit
PB: predicated region body
PF: predicated region fallthrough
CT: control target
= control target key end

     0   :  { %8 = vsyncpa [#allocation3], 0  ;;  %s1173_s0 = inlined_call_operand.hbm [shape: bf16[2,32,128], index: 0, kind: input, shape index: {}]   ;;  %s1174_s1 = inlined_call_operand.hbm [shape: bf16[128,128], index: 1, kind: input, shape index: {}]   ;;  %s1175_s2 = inlined_call_operand.hbm [shape: f32[32,128], index: 2, kind: input, shape index: {}]   ;;  %s1176_s3 = inlined_call_operand.hbm [shape: bf16[2,32,128], index: 3, kind: output, shape index: {}]  }
   0x1   :  { %10 = vsyncpa [#allocation3 + $0x1], 0 }
   0x2   :  { %11 = vsyncpa [#allocation6], 0 }
   0x3   :  { %12 = vsyncpa [#allocation4], 0 }
   0x4   :  { %14 = vsyncpa [#allocation4 + $0x1], 0  ;;  %s908_s12 = smov 0   ;;  %s910_s13 = smov 0  }
   0x5   :  { %s912_s14 = smov 0   ;;  %s914_s15 = smov 0  }
   0x6   :  { %s916_s16 = smov 0   ;;  %s918_s17 = smov 0  }
   0x7 LB: > { %s525_s18 = sadd.s32 4294967295, %s876_s17   ;;  %s526_s19 = sadd.s32 4294967294, %s876_s17   ;;  %s876_s17 = sphi %s918_s17, %s20_s17   ;;  %s872_s16 = sphi %s916_s16, %s1198_s16   ;;  %s868_s15 = sphi %s914_s15, %s1197_s15   ;;  %s864_s14 = sphi %s912_s14, %s1196_s14   ;;  %s860_s13 = sphi %s910_s13, %s1195_s13   ;;  %s856_s12 = sphi %s908_s12, %s1194_s12  }
   0x8   : > { %p54_p0 = scmp.ne.s32.totalorder %s860_s13, %s856_s12  ;;  %p942_p1 = scmp.eq.s32.totalorder %s525_s18, 0 }
   0x9   : > { %p946_p2 = scmp.eq.s32.totalorder %s525_s18, 1  ;;  %p133_p3 = scmp.eq.s32.totalorder %s526_s19, 1 }
   0xa   : > { %s1181_s20 = scalar_select %p942_p1, 1, 0 }
   0xb   : > { %p952_p4 = por %p942_p1, %p54_p0  ;;  %p527_p5 = scmp.ge.s32.totalorder %s876_s17, 1 }
   0xc   : > { %p957_p6 = por %p133_p3, %p54_p0  ;;  %p140_p7 = scmp.lt.s32.totalorder %s876_s17, 3 }
   0xd   : > { %s1183_s22 = scalar_select %p952_p4, 1, 0 }
   0xe   : > { %s1184_s23 = scalar_select %p957_p6, 1, 0 }
   0xf   : > { %p962_p8 = pnand %p527_p5, %p140_p7  ;;  %s878_s25 = smov [#allocation5]  }
  0x10   : > { %s152_s26 = sshll.u32 %s878_s25, 4  ;;  %s879_s28 = smov [#allocation7]   ;;  %s966_s26 = int_to_ptr.vmem [resolvable:$true] %s152_s26 }
  0x11   : > { %p617_p9 = pneg %p962_p8  ;;  %s168_s29 = sshll.u32 %s879_s28, 4  ;;  %s977_s29 = int_to_ptr.vmem [resolvable:$true] %s168_s29 }
  0x12   : > { %s704_s5 = scalar_lea.hbm %s1174_s1, 1024 }
  0x13   : > { %p973_p11 = pnand %p617_p9, %p942_p1  ;;  %p705_p12 = scmp.ne.s32.totalorder %s1174_s1, %s704_s5 }
  0x14   : > { %p711_p5 = scmp.lt.u32.totalorder %s704_s5, %s1174_s1 }
  0x15   : > { %p706_p13 = pneg %p973_p11 }
  0x17   : > { %p707_p0 = pnand %p706_p13, %p705_p12 }
  0x19   : > { %p708_p3 = pneg %p707_p0 }
  0x1b   : > { %p713_p7 = pnand %p711_p5, %p708_p3 }
  0x1d   : > { %716 = shalt.err (!%p713_p7)
}
  0x1e   : > { %s717_s10 = scalar_lea.vmem %s966_s26, 1024  ;;  %p725_p1 = scmp.lt.s32.totalorder %s966_s26, %s966_s26 }
  0x1f   : > { %p718_p9 = scmp.ne.s32.totalorder %s966_s26, %s717_s10  ;;  %p726_p12 = scmp.lt.s32.totalorder %s717_s10, %s717_s10 }
  0x21   : > { %p720_p10 = pnand %p718_p9, %p706_p13  ;;  %p727_p0 = por %p726_p12, %p725_p1 }
  0x23   : > { %p721_p6 = pneg %p720_p10 }
  0x25   : > { %p728_p4 = pnand %p727_p0, %p721_p6 }
  0x27   : > { %731 = shalt.err (!%p728_p4)
}
  0x28   : > { %s880_s11 = smov 64   ;;  %s881_s18 = smov 4  }
  0x29   : > { %620 = dma.hbm_to_vmem [thread:$0]  (!%p973_p11), %s1174_s1, 1024, %s966_s26, [#allocation6], %s880_s11, %s880_s11, %s881_s18  }
  0x2a   : > { %s732_s4 = scalar_lea.hbm %s1175_s2, 512 }
  0x2b   : > { %p733_p1 = scmp.ne.s32.totalorder %s1175_s2, %s732_s4  ;;  %p739_p10 = scmp.lt.u32.totalorder %s732_s4, %s1175_s2 }
  0x2d   : > { %p735_p4 = pnand %p733_p1, %p706_p13 }
  0x2f   : > { %p736_p6 = pneg %p735_p4 }
  0x31   : > { %p741_p3 = pnand %p739_p10, %p736_p6 }
  0x33   : > { %744 = shalt.err (!%p741_p3)
}
  0x34   : > { %s745_s26 = scalar_lea.vmem %s977_s29, 512  ;;  %p753_p12 = scmp.lt.s32.totalorder %s977_s29, %s977_s29 }
  0x35   : > { %p746_p5 = scmp.ne.s32.totalorder %s977_s29, %s745_s26  ;;  %p754_p0 = scmp.lt.s32.totalorder %s745_s26, %s745_s26 }
  0x37   : > { %p748_p7 = pnand %p746_p5, %p706_p13  ;;  %p755_p1 = por %p754_p0, %p753_p12 }
  0x39   : > { %p749_p9 = pneg %p748_p7 }
  0x3b   : > { %p756_p4 = pnand %p755_p1, %p749_p9 }
  0x3d   : > { %759 = shalt.err (!%p756_p4)
}
  0x3e   : > { %s882_s9 = smov 128   ;;  %s883_s10 = smov 8  }
  0x3f   : > { %623 = dma.hbm_to_vmem [thread:$0]  (!%p973_p11), %s1175_s2, 512, %s977_s29, [#allocation6], %s882_s9, %s882_s9, %s883_s10  }
  0x40   : > { %s29_s28 = sadd.s32 1, %s872_s16  ;;  %s41_s30 = sadd.s32 1, %s864_s14 }
  0x41   : > { %p30_p13 = scmp.ge.s32.totalorder %s29_s28, 2  ;;  %p48_p6 = scmp.ne.s32.totalorder %s864_s14, %s860_s13 }
  0x42   : > { %p49_p10 = scmp.eq.s32.totalorder %s876_s17, 0  ;;  %p634_p3 = scmp.lt.s32.totalorder %s876_s17, 2 }
  0x43   : > { %s1200_s28 = smov (%p30_p13, %s29_s28), 0  ;;  %p1044_p7 = por %p946_p2, %p48_p6 }
  0x44   : > { %p50_p5 = por %p49_p10, %p48_p6  ;;  %s36_s27 = ssub.s32 %s872_s16, %s1200_s28 }
  0x45   : > { %s1187_s4 = scalar_select %p1044_p7, 1, 0 }
  0x46   : > { %s182_s5 = sand.u32 1, %s864_s14   ;;  %p39_p9 = scmp.eq.s32.totalorder %s36_s27, 0 }
  0x47   : > { %s531_s29 = sshll.u32 %s182_s5, 4  ;;  %s558_s6 = sshll.u32 %s872_s16, 8 }
  0x48   : > { %s1053_s7 = scalar_select %p39_p9, %s864_s14, %s41_s30  }
  0x49   : > { %s1058_s9 = scalar_lea.hbm %s1173_s0, %s558_s6  ;;  %s186_s21 = scalar_lea.vmem [#allocation2], %s531_s29 }
  0x4a   : > { %s195_s10 = sshll.u32 %s186_s21, 4  ;;  %p1062_p2 = pnand %p634_p3, %p50_p5  ;;  %s1066_s10 = int_to_ptr.vmem [resolvable:$true] %s195_s10 }
  0x4b   : > { %s1068_s25 = scalar_lea.sflag [#allocation3], %s182_s5  ;;  %s760_s30 = scalar_lea.hbm %s1058_s9, 256 }
  0x4c   : > { %p761_p11 = scmp.ne.s32.totalorder %s1058_s9, %s760_s30  ;;  %p762_p12 = pneg %p1062_p2 }
  0x4d   : > { %s765_s6 = scalar_lea.hbm %s1173_s0, 512  ;;  %p766_p4 = scmp.lt.u32.totalorder %s1058_s9, %s1173_s0 }
  0x4e   : > { %p763_p0 = pnand %p762_p12, %p761_p11  ;;  %p767_p13 = scmp.lt.u32.totalorder %s765_s6, %s760_s30 }
  0x4f   : > { %p769_p10 = scmp.lt.u32.totalorder %s760_s30, %s1058_s9 }
  0x50   : > { %p764_p1 = pneg %p763_p0  ;;  %p768_p6 = por %p767_p13, %p766_p4 }
  0x52   : > { %p770_p3 = por %p769_p10, %p768_p6 }
  0x54   : > { %p771_p5 = pnand %p770_p3, %p764_p1 }
  0x56   : > { %774 = shalt.err (!%p771_p5)
}
  0x57   : > { %s775_s5 = scalar_lea.vmem %s1066_s10, 256  ;;  %s884_s21 = smov [#allocation2]  }
  0x58   : > { %p776_p9 = scmp.ne.s32.totalorder %s1066_s10, %s775_s5  ;;  %s780_s27 = sshll.u32 %s884_s21, 4  ;;  %s781_s27 = int_to_ptr.vmem [resolvable:$false] %s780_s27 }
  0x59   : > { %s782_s29 = scalar_lea.vmem %s781_s27, 512  ;;  %p783_p7 = scmp.lt.s32.totalorder %s1066_s10, %s781_s27 }
  0x5a   : > { %p778_p11 = pnand %p776_p9, %p762_p12  ;;  %p784_p4 = scmp.lt.s32.totalorder %s782_s29, %s775_s5 }
  0x5c   : > { %p779_p0 = pneg %p778_p11  ;;  %p785_p13 = por %p784_p4, %p783_p7 }
  0x5e   : > { %p786_p6 = pnand %p785_p13, %p779_p0 }
  0x60   : > { %789 = shalt.err (!%p786_p6)
}
  0x61   : > { %627 = dma.hbm_to_vmem [thread:$0]  (!%p1062_p2), %s1058_s9, 256, %s1066_s10, %s1068_s25, %s880_s11, %s880_s11, %s881_s18  }
  0x62   : > { %207 = sbr.rel (%p962_p8) target bundleno = 376 (0x178), region = 32  ;;  %s1102_s30 = sand.u32 (!%p962_p8), 1, %s860_s13  }
  0x63   : > { %s535_s6 = sshll.u32 (!%p962_p8), %s1102_s30, 4  ;;  %s210_s8 = scalar_lea.sflag (!%p962_p8), [#allocation3], %s1102_s30 }
  0x64   : > { %s213_s19 = scalar_lea.vmem (!%p962_p8), [#allocation2], %s535_s6  ;;  %p1189_p7 = scmp.ne.s32.totalorder (!%p962_p8), %s1183_s22, 0 }
  0x69   : > { %843 = dma.done.wait (%p1189_p7), %s210_s8, 256  }
  0x6a   : > { %845 = vsyncadd (%p1189_p7), %s210_s8, 4294967040  ;;  %p1190_p2 = scmp.ne.s32.totalorder %s1181_s20, 0 }
  0x6c   : > { %847 = dma.done.wait (%p1190_p2), [#allocation6], 1536  }
  0x6d   : > { %849 = vsyncadd (%p1190_p2), [#allocation6], 4294965760  ;;  %v694_v0 = vld [vmem:[#allocation5] sm:$0xff]   ;;  %v695_v1 = vld [vmem:[#allocation5 + $0x8] sm:$0xff]   ;;  %s243_s20 = scalar_lea.vmem [#allocation8], %s535_s6  ;;  %s563_s24 = sshll.u32 %s868_s15, 8 }
  0x6e   : > { %585 = vmatprep.subr.bf16.mxu0 %v694_v0  ;;  %v696_v2 = vld [vmem:[#allocation5 + $0x10] sm:$0xff]   ;;  %v697_v3 = vld [vmem:[#allocation5 + $0x18] sm:$0xff]   ;;  %v698_v5 = vld [vmem:[#allocation5 + $0x20] sm:$0xff]   ;;  %s417_s22 = sshll.u32 %s243_s20, 4  ;;  %s1124_s9 = scalar_lea.hbm %s1176_s3, %s563_s24  ;;  %s1119_s22 = int_to_ptr.vmem [resolvable:$true] %s417_s22 }
  0x6f   : > { %586 = vmatpush3.bf16.msra.mxu0 %v694_v0  ;;  %v702_v4 = vld [vmem:[%s213_s19] sm:$0xff]   ;;  %v699_v6 = vld [vmem:[#allocation5 + $0x28] sm:$0xff]   ;;  %v701_v8 = vld [vmem:[#allocation5 + $0x38] sm:$0xff]   ;;  %s402_s15 = scalar_lea.sflag [#allocation4], %s1102_s30  ;;  %s790_s10 = scalar_lea.vmem %s1119_s22, 256 }
  0x70   : > { %587 = vmatprep.subr.bf16.mxu0 %v695_v1  ;;  %601 = vmatprep.mubr.bf16.mxu0 %v702_v4  ;;  %v700_v7 = vld [vmem:[#allocation5 + $0x30] sm:$0xff]   ;;  %v703_v9 = vld [vmem:[%s213_s19 + $0x8] sm:$0xff]   ;;  %v268_v14 = vld [vmem:[#allocation7] sm:$0xff]  ;;  %p791_p8 = scmp.ne.s32.totalorder %s1119_s22, %s790_s10  ;;  %p1191_p12 = scmp.ne.s32.totalorder %s1187_s4, 0 }
  0x71   : > { %v270_v10 = vld [vmem:[#allocation7 + $0x10] sm:$0xff]  ;;  %v271_v12 = vld [vmem:[#allocation7 + $0x18] sm:$0xff]  ;;  %v269_v15 = vld [vmem:[#allocation7 + $0x8] sm:$0xff]  ;;  %s885_s25 = smov [#allocation8]  }
  0x72   : > { %p792_p1 = pnand %p791_p8, %p1191_p12  ;;  %s794_s26 = sshll.u32 %s885_s25, 4  ;;  %s795_s26 = int_to_ptr.vmem [resolvable:$false] %s794_s26 }
  0x73   : > { %588 = vmatpush3.bf16.msra.mxu0 %v695_v1  ;;  %s796_s5 = scalar_lea.vmem %s795_s26, 512  ;;  %p797_p3 = scmp.lt.s32.totalorder %s1119_s22, %s795_s26 }
  0x74   : > { %589 = vmatprep.subr.bf16.mxu0 %v696_v2  ;;  %p793_p10 = pneg %p792_p1  ;;  %p798_p5 = scmp.lt.s32.totalorder %s796_s5, %s790_s10 }
  0x76   : > { %p799_p9 = por %p798_p5, %p797_p3 }
  0x77   : > { %590 = vmatpush3.bf16.msra.mxu0 %v696_v2 }
  0x78   : > { %591 = vmatprep.subr.bf16.mxu0 %v697_v3  ;;  %p800_p11 = pnand %p799_p9, %p793_p10 }
  0x7b   : > { %592 = vmatpush3.bf16.msra.mxu0 %v697_v3 }
  0x7c   : > { %593 = vmatprep.subr.bf16.mxu0 %v698_v5 }
  0x7f   : > { %594 = vmatpush3.bf16.msra.mxu0 %v698_v5 }
  0x80   : > { %595 = vmatprep.subr.bf16.mxu0 %v699_v6 }
  0x83   : > { %596 = vmatpush3.bf16.msra.mxu0 %v699_v6 }
  0x84   : > { %597 = vmatprep.subr.bf16.mxu0 %v700_v7 }
  0x87   : > { %598 = vmatpush3.bf16.msra.mxu0 %v700_v7 }
  0x88   : > { %599 = vmatprep.subr.bf16.mxu0 %v701_v8 }
  0x8b   : > { %600 = vmatpush3.bf16.msra.mxu0 %v701_v8 }
  0x8e   : > { %602 = vmatmul.mubr.bf16.vlgmr.msra.gmra.mrb[0].mxu0 %v703_v9 }
 0x161   : > { %v603_v11 = vpop.f32.mrb[0].mxu0 }
 0x162   : > { %v366_v13 = vpop.f32.mrb[1].mxu0  ;;  %v375_v17 = vadd.f32 %v603_v11, %v270_v10 }
 0x163   : > { %v604_v16 = vpop.f32.mrb[2].mxu0  ;;  %v367_v20 = vadd.f32 %v366_v13, %v268_v14 }
 0x164   : > { %v378_v18 = vadd.f32 %v604_v16, %v271_v12  ;;  %v369_v19 = vpop.f32.mrb[3].mxu0 }
 0x165   : > { %v370_v21 = vadd.f32 %v369_v19, %v269_v15 }
 0x166   : > { %v572_v22 = vpack.c.bf16 %v378_v18, %v375_v17 }
 0x167   : > { %v567_v23 = vpack.c.bf16 %v370_v21, %v367_v20 }
 0x168   : > { %574 = vst [vmem:[%s243_s20 + $0x8] sm:$0xff] %v572_v22  }
 0x169   : > { %568 = vst [vmem:[%s243_s20] sm:$0xff] %v567_v23  }
 0x16a   : > { %803 = shalt.err (!%p800_p11)
}
 0x16b   : > { %s804_s21 = scalar_lea.hbm %s1124_s9, 256  ;;  %s808_s6 = scalar_lea.hbm %s1176_s3, 512 }
 0x16c   : > { %p805_p0 = scmp.ne.s32.totalorder %s1124_s9, %s804_s21  ;;  %p809_p6 = scmp.lt.u32.totalorder %s1124_s9, %s1176_s3 }
 0x16d   : > { %p810_p7 = scmp.lt.u32.totalorder %s808_s6, %s804_s21  ;;  %p812_p8 = scmp.lt.u32.totalorder %s804_s21, %s1124_s9 }
 0x16e   : > { %p806_p4 = pnand %p805_p0, %p1191_p12 }
 0x16f   : > { %p811_p2 = por %p810_p7, %p809_p6 }
 0x170   : > { %p807_p13 = pneg %p806_p4 }
 0x171   : > { %p813_p1 = por %p812_p8, %p811_p2 }
 0x173   : > { %p814_p10 = pnand %p813_p1, %p807_p13 }
 0x175   : > { %817 = shalt.err (!%p814_p10)
}
 0x176   : > { %s886_s20 = smov 64   ;;  %s887_s24 = smov 4  }
 0x177   : > { %615 = dma.vmem_to_hbm [thread:$0]  (%p1191_p12), %s1119_s22, 256, %s1124_s9, %s402_s15, %s886_s20, %s886_s20, %s887_s24  }
 0x178 PF: > { %s432_s11 = sand.u32 1, %s856_s12   ;;  %p1192_p3 = scmp.ne.s32.totalorder %s1184_s23, 0 }
 0x179   : > { %p1193_p5 = scmp.ge.s32.totalorder %s876_s17, 2  ;;  %s433_s18 = scalar_lea.sflag [#allocation4], %s432_s11 }
 0x17b   : > { %p629_p9 = pnand %p1193_p5, %p1192_p3 }
 0x17d   : > { %851 = dma.done.wait (!%p629_p9), %s433_s18, 256  }
 0x17e   : > { %853 = vsyncadd (!%p629_p9), %s433_s18, 4294967040  ;;  %s20_s17 = sadd.s32 1, %s876_s17   ;;  %s1194_s12 = smov %s860_s13 }
 0x17f   : > { %p17_p11 = scmp.ge.s32.totalorder %s20_s17, 4   ;;  %s1195_s13 = smov %s864_s14 }
 0x180   : > { %s1196_s14 = smov %s1053_s7  ;;  %s1197_s15 = smov %s872_s16 }
 0x181   : > { %s1198_s16 = smov %s1200_s28  ;;  %19 = sbr.rel (!%p17_p11) target bundleno = 7 (0x7), region = 86 }
 0x188   :  { %438 = vsyncpa [#allocation3], 1 }
 0x189   :  { %440 = vsyncpa [#allocation3 + $0x1], 1 }
 0x18a   :  { %441 = vsyncpa [#allocation6], 1 }
 0x18b   :  { %442 = vsyncpa [#allocation4], 1 }
 0x18c   :  { %444 = vsyncpa [#allocation4 + $0x1], 1 }

</bundles_post_ra>
